<compile_context>
chip_gen: v5e
topology: v5e:2x2
jax: 0.10.0
libtpu: 0.0.40
codegen_flags: <defaults>
</compile_context>

<pallas_src>
import jax
import jax.numpy as jnp
from jax import lax
from jax.experimental import pallas as pl
from jax.experimental.pallas import tpu as pltpu

B = 8        # batch (sublane-full)
T = 8        # sequence length
IN = 1       # LSTM input size
H = 16       # LSTM hidden size
G = 4 * H    # gate width (PyTorch order: i, f, g, o)
P_ROWS = 2 * H + T * H   # packed-parameter rows: 32 header + 128 for w_sel


def lstm_kernel(x_ref, p_ref, out_ref):
    """
    x_ref:   (T*B, 1)      float32  x in t-major order (row = t*B + b)
    p_ref:   (P_ROWS, 4H)  float32  packed, pre-scaled parameters:
               rows 0..H-1        : W_hh^T * gate_scale
               row  H             : W_ih^T * gate_scale
               row  H+1           : (b_ih + b_hh) * gate_scale
               row  H+2           : gate_scale   (0.5 for i/f/o, 1.0 for g)
               row  H+3           : gate_shift   (0.5 for i/f/o, 0.0 for g)
               row  H+4, lanes<T  : b_out (broadcast)
               rows 2H..2H+T*H-1,
                    lanes < T     : block-diag output projection w_sel[t*H+d, t]=w_out[d]
    out_ref: (B, T + 2H)   float32  lanes [0,T)=mu (B,T), [T,T+H)=h, [T+H,T+2H)=c
    """
    w_hh_s = p_ref[0:H, :]                 # (H, 4H)  pre-scaled recurrent weights
    w_ih_s = p_ref[H:H + 1, :]             # (1, 4H)
    b_s = p_ref[H + 1:H + 2, :]            # (1, 4H)
    gate_scale = p_ref[H + 2:H + 3, :]     # (1, 4H)
    gate_shift = p_ref[H + 3:H + 4, :]     # (1, 4H)
    b_out_row = p_ref[H + 4:H + 5, 0:T]    # (1, T)
    w_sel = p_ref[2 * H:, 0:T]             # (T*H, T) block-diagonal w_out

    # Input projection + bias hoisted out of the recurrence: one broadcast MAC.
    gates_x = x_ref[...] * w_ih_s + b_s    # (T*B, 4H)

    h = jnp.zeros((B, H), jnp.float32)
    c = jnp.zeros((B, H), jnp.float32)
    h_list = []

    # T=8 is static: fully unroll so every slice is static and steps overlap.
    for t in range(T):
        gates = gates_x[t * B:(t + 1) * B, :] + jnp.dot(
            h, w_hh_s, preferred_element_type=jnp.float32)               # (B, 4H)
        # sigmoid(z)=0.5*tanh(0.5 z)+0.5; 0.5 pre-scale already folded into weights.
        acts = jnp.tanh(gates) * gate_scale + gate_shift                  # fused i,f,g,o
        i_g = acts[:, 0 * H:1 * H]
        f_g = acts[:, 1 * H:2 * H]
        g_g = acts[:, 2 * H:3 * H]
        o_g = acts[:, 3 * H:4 * H]
        c = f_g * c + i_g * g_g
        h = o_g * jnp.tanh(c)
        h_list.append(h)                                                  # register-resident

    # Epilogue: one lane-concat + one block-diagonal dot gives mu directly as (B, T);
    # then one lane-dense packed store for (mu, h, c).
    h_cat = jnp.concatenate(h_list, axis=1)                               # (B, T*H)
    mu = jnp.dot(h_cat, w_sel, preferred_element_type=jnp.float32) + b_out_row  # (B, T)
    out_ref[...] = jnp.concatenate([mu, h, c], axis=1)                    # (B, T+2H)


def standard_gaussian_rnn_forward(x, packed_params):
    """x: (B, T, 1) float32 -> (mu (B, T, 1), (h (1, B, H), c (1, B, H)))"""
    # t-major flat layout so the kernel's per-step rows are contiguous static slices.
    x_flat = jnp.transpose(x[:, :, 0]).reshape(T * B, 1)                  # (T*B, 1)

    vmem = pl.BlockSpec(memory_space=pltpu.MemorySpace.VMEM)
    out = pl.pallas_call(
        lstm_kernel,
        out_shape=jax.ShapeDtypeStruct((B, T + 2 * H), jnp.float32),
        in_specs=[vmem, vmem],
        out_specs=vmem,
    )(x_flat, packed_params)

    mu = out[:, 0:T][:, :, None]                                          # (B, T, 1)
    h = out[:, T:T + H]
    c = out[:, T + H:T + 2 * H]
    return mu, (h[None, :, :], c[None, :, :])


def init_raw_params(key):
    # PyTorch-style uniform(-1/sqrt(H), 1/sqrt(H)) init, deterministic.
    k = 1.0 / jnp.sqrt(jnp.float32(H))
    keys = jax.random.split(key, 6)
    w_ih = jax.random.uniform(keys[0], (IN, G), jnp.float32, -k, k)       # W_ih^T
    w_hh = jax.random.uniform(keys[1], (H, G), jnp.float32, -k, k)        # W_hh^T
    b_ih = jax.random.uniform(keys[2], (1, G), jnp.float32, -k, k)
    b_hh = jax.random.uniform(keys[3], (1, G), jnp.float32, -k, k)
    b = b_ih + b_hh
    w_out = jax.random.uniform(keys[4], (H, 1), jnp.float32, -k, k)       # Linear weight^T
    b_out = jax.random.uniform(keys[5], (1, 1), jnp.float32, -k, k)
    return (w_ih, w_hh, b, w_out, b_out)


def pack_params(raw):
    """Pre-scale and pack all parameters into one (P_ROWS, 4H) tensor (one input DMA)."""
    w_ih, w_hh, b, w_out, b_out = raw
    col = jnp.arange(G)
    is_g = (col >= 2 * H) & (col < 3 * H)
    gate_scale = jnp.where(is_g, 1.0, 0.5).astype(jnp.float32)            # (4H,)
    gate_shift = jnp.where(is_g, 0.0, 0.5).astype(jnp.float32)            # (4H,)

    p = jnp.zeros((P_ROWS, G), jnp.float32)
    p = p.at[0:H, :].set(w_hh * gate_scale[None, :])
    p = p.at[H, :].set(w_ih[0] * gate_scale)
    p = p.at[H + 1, :].set(b[0] * gate_scale)
    p = p.at[H + 2, :].set(gate_scale)
    p = p.at[H + 3, :].set(gate_shift)
    p = p.at[H + 4, 0:T].set(jnp.full((T,), b_out[0, 0], jnp.float32))
    # Block-diagonal output projection: w_sel[t*H+d, t] = w_out[d].
    w_sel = jnp.kron(jnp.eye(T, dtype=jnp.float32), w_out)                # (T*H, T)
    p = p.at[2 * H:, 0:T].set(w_sel)
    return p


def reference_forward(x, raw_params):
    """Pure-JAX reference of the same LSTM + Linear (for correctness check)."""
    w_ih, w_hh, b, w_out, b_out = raw_params
    bsz = x.shape[0]

    def step(carry, x_t):
        h, c = carry
        gates = x_t @ w_ih + h @ w_hh + b
        i_g = jax.nn.sigmoid(gates[:, 0 * H:1 * H])
        f_g = jax.nn.sigmoid(gates[:, 1 * H:2 * H])
        g_g = jnp.tanh(gates[:, 2 * H:3 * H])
        o_g = jax.nn.sigmoid(gates[:, 3 * H:4 * H])
        c_new = f_g * c + i_g * g_g
        h_new = o_g * jnp.tanh(c_new)
        mu_t = h_new @ w_out + b_out
        return (h_new, c_new), mu_t

    x_tb = jnp.transpose(x, (1, 0, 2))                                    # (T, B, 1)
    (h, c), mu_tb = lax.scan(step, (jnp.zeros((bsz, H)), jnp.zeros((bsz, H))), x_tb)
    mu = jnp.transpose(mu_tb, (1, 0, 2))                                  # (B, T, 1)
    return mu, (h[None], c[None])


if __name__ == "__main__":
    key = jax.random.PRNGKey(0)
    kp, kx = jax.random.split(key)
    raw_params = init_raw_params(kp)
    packed_params = pack_params(raw_params)
    x = jax.random.normal(kx, (B, T, IN), jnp.float32)

    mu, (h, c) = standard_gaussian_rnn_forward(x, packed_params)
    jax.block_until_ready((mu, h, c))

    mu_ref, (h_ref, c_ref) = reference_forward(x, raw_params)
    assert mu.shape == (B, T, 1) and h.shape == (1, B, H) and c.shape == (1, B, H)
    assert jnp.allclose(mu, mu_ref, atol=2e-5, rtol=2e-5)
    assert jnp.allclose(h, h_ref, atol=2e-5, rtol=2e-5)
    assert jnp.allclose(c, c_ref, atol=2e-5, rtol=2e-5)
    print("KERNEL_OK")
</pallas_src>

<mosaic_0001>
module attributes {stable_mosaic.version = 11 : i64} {
  func.func @lstm_kernel(%arg0: memref<64x1xf32, #tpu.memory_space<vmem>>, %arg1: memref<160x64xf32, #tpu.memory_space<vmem>>, %arg2: memref<8x40xf32, #tpu.memory_space<vmem>>) attributes {dimension_semantics = [], scalar_prefetch = 0 : i64, scratch_operands = 0 : i64, tpu.core_type = #tpu.core_type<tc>} {
    %c0 = arith.constant 0 : index
    %c0_0 = arith.constant 0 : index
    %0 = vector.load %arg1[%c0, %c0_0] : memref<160x64xf32, #tpu.memory_space<vmem>>, vector<16x64xf32>
    %c16 = arith.constant 16 : index
    %c0_1 = arith.constant 0 : index
    %1 = vector.load %arg1[%c16, %c0_1] : memref<160x64xf32, #tpu.memory_space<vmem>>, vector<1x64xf32>
    %c17 = arith.constant 17 : index
    %c0_2 = arith.constant 0 : index
    %2 = vector.load %arg1[%c17, %c0_2] : memref<160x64xf32, #tpu.memory_space<vmem>>, vector<1x64xf32>
    %c18 = arith.constant 18 : index
    %c0_3 = arith.constant 0 : index
    %3 = vector.load %arg1[%c18, %c0_3] : memref<160x64xf32, #tpu.memory_space<vmem>>, vector<1x64xf32>
    %c19 = arith.constant 19 : index
    %c0_4 = arith.constant 0 : index
    %4 = vector.load %arg1[%c19, %c0_4] : memref<160x64xf32, #tpu.memory_space<vmem>>, vector<1x64xf32>
    %c20 = arith.constant 20 : index
    %c0_5 = arith.constant 0 : index
    %5 = vector.load %arg1[%c20, %c0_5] : memref<160x64xf32, #tpu.memory_space<vmem>>, vector<1x8xf32>
    %c32 = arith.constant 32 : index
    %c0_6 = arith.constant 0 : index
    %6 = vector.load %arg1[%c32, %c0_6] : memref<160x64xf32, #tpu.memory_space<vmem>>, vector<128x8xf32>
    %c0_7 = arith.constant 0 : index
    %c0_8 = arith.constant 0 : index
    %7 = vector.load %arg0[%c0_7, %c0_8] : memref<64x1xf32, #tpu.memory_space<vmem>>, vector<64x1xf32>
    %8 = vector.broadcast %7 : vector<64x1xf32> to vector<64x64xf32>
    %9 = vector.broadcast %1 : vector<1x64xf32> to vector<64x64xf32>
    %10 = arith.mulf %8, %9 : vector<64x64xf32>
    %11 = vector.broadcast %2 : vector<1x64xf32> to vector<64x64xf32>
    %12 = arith.addf %10, %11 : vector<64x64xf32>
    %cst = arith.constant 0.000000e+00 : f32
    %13 = vector.broadcast %cst : f32 to vector<8x16xf32>
    %cst_9 = arith.constant 0.000000e+00 : f32
    %14 = vector.broadcast %cst_9 : f32 to vector<8x16xf32>
    %15 = vector.extract_strided_slice %12 {offsets = [0, 0], sizes = [8, 64], strides = [1, 1]} : vector<64x64xf32> to vector<8x64xf32>
    %cst_10 = arith.constant dense<0.000000e+00> : vector<8x64xf32>
    %16 = tpu.matmul %13, %0, %cst_10 {dimension_numbers = #tpu.dot_dimension_numbers<[1], [0], [0], [1], [0, 0, 1, 1], [], []>} : vector<8x16xf32>, vector<16x64xf32>, vector<8x64xf32> -> vector<8x64xf32>
    %17 = arith.addf %15, %16 : vector<8x64xf32>
    %18 = math.tanh %17 : vector<8x64xf32>
    %19 = vector.broadcast %3 : vector<1x64xf32> to vector<8x64xf32>
    %20 = arith.mulf %18, %19 : vector<8x64xf32>
    %21 = vector.broadcast %4 : vector<1x64xf32> to vector<8x64xf32>
    %22 = arith.addf %20, %21 : vector<8x64xf32>
    %23 = vector.extract_strided_slice %22 {offsets = [0, 0], sizes = [8, 16], strides = [1, 1]} : vector<8x64xf32> to vector<8x16xf32>
    %24 = vector.extract_strided_slice %22 {offsets = [0, 16], sizes = [8, 16], strides = [1, 1]} : vector<8x64xf32> to vector<8x16xf32>
    %25 = vector.extract_strided_slice %22 {offsets = [0, 32], sizes = [8, 16], strides = [1, 1]} : vector<8x64xf32> to vector<8x16xf32>
    %26 = vector.extract_strided_slice %22 {offsets = [0, 48], sizes = [8, 16], strides = [1, 1]} : vector<8x64xf32> to vector<8x16xf32>
    %27 = arith.mulf %24, %14 : vector<8x16xf32>
    %28 = arith.mulf %23, %25 : vector<8x16xf32>
    %29 = arith.addf %27, %28 : vector<8x16xf32>
    %30 = math.tanh %29 : vector<8x16xf32>
    %31 = arith.mulf %26, %30 : vector<8x16xf32>
    %32 = vector.extract_strided_slice %12 {offsets = [8, 0], sizes = [8, 64], strides = [1, 1]} : vector<64x64xf32> to vector<8x64xf32>
    %cst_11 = arith.constant dense<0.000000e+00> : vector<8x64xf32>
    %33 = tpu.matmul %31, %0, %cst_11 {dimension_numbers = #tpu.dot_dimension_numbers<[1], [0], [0], [1], [0, 0, 1, 1], [], []>} : vector<8x16xf32>, vector<16x64xf32>, vector<8x64xf32> -> vector<8x64xf32>
    %34 = arith.addf %32, %33 : vector<8x64xf32>
    %35 = math.tanh %34 : vector<8x64xf32>
    %36 = vector.broadcast %3 : vector<1x64xf32> to vector<8x64xf32>
    %37 = arith.mulf %35, %36 : vector<8x64xf32>
    %38 = vector.broadcast %4 : vector<1x64xf32> to vector<8x64xf32>
    %39 = arith.addf %37, %38 : vector<8x64xf32>
    %40 = vector.extract_strided_slice %39 {offsets = [0, 0], sizes = [8, 16], strides = [1, 1]} : vector<8x64xf32> to vector<8x16xf32>
    %41 = vector.extract_strided_slice %39 {offsets = [0, 16], sizes = [8, 16], strides = [1, 1]} : vector<8x64xf32> to vector<8x16xf32>
    %42 = vector.extract_strided_slice %39 {offsets = [0, 32], sizes = [8, 16], strides = [1, 1]} : vector<8x64xf32> to vector<8x16xf32>
    %43 = vector.extract_strided_slice %39 {offsets = [0, 48], sizes = [8, 16], strides = [1, 1]} : vector<8x64xf32> to vector<8x16xf32>
    %44 = arith.mulf %41, %29 : vector<8x16xf32>
    %45 = arith.mulf %40, %42 : vector<8x16xf32>
    %46 = arith.addf %44, %45 : vector<8x16xf32>
    %47 = math.tanh %46 : vector<8x16xf32>
    %48 = arith.mulf %43, %47 : vector<8x16xf32>
    %49 = vector.extract_strided_slice %12 {offsets = [16, 0], sizes = [8, 64], strides = [1, 1]} : vector<64x64xf32> to vector<8x64xf32>
    %cst_12 = arith.constant dense<0.000000e+00> : vector<8x64xf32>
    %50 = tpu.matmul %48, %0, %cst_12 {dimension_numbers = #tpu.dot_dimension_numbers<[1], [0], [0], [1], [0, 0, 1, 1], [], []>} : vector<8x16xf32>, vector<16x64xf32>, vector<8x64xf32> -> vector<8x64xf32>
    %51 = arith.addf %49, %50 : vector<8x64xf32>
    %52 = math.tanh %51 : vector<8x64xf32>
    %53 = vector.broadcast %3 : vector<1x64xf32> to vector<8x64xf32>
    %54 = arith.mulf %52, %53 : vector<8x64xf32>
    %55 = vector.broadcast %4 : vector<1x64xf32> to vector<8x64xf32>
    %56 = arith.addf %54, %55 : vector<8x64xf32>
    %57 = vector.extract_strided_slice %56 {offsets = [0, 0], sizes = [8, 16], strides = [1, 1]} : vector<8x64xf32> to vector<8x16xf32>
    %58 = vector.extract_strided_slice %56 {offsets = [0, 16], sizes = [8, 16], strides = [1, 1]} : vector<8x64xf32> to vector<8x16xf32>
    %59 = vector.extract_strided_slice %56 {offsets = [0, 32], sizes = [8, 16], strides = [1, 1]} : vector<8x64xf32> to vector<8x16xf32>
    %60 = vector.extract_strided_slice %56 {offsets = [0, 48], sizes = [8, 16], strides = [1, 1]} : vector<8x64xf32> to vector<8x16xf32>
    %61 = arith.mulf %58, %46 : vector<8x16xf32>
    %62 = arith.mulf %57, %59 : vector<8x16xf32>
    %63 = arith.addf %61, %62 : vector<8x16xf32>
    %64 = math.tanh %63 : vector<8x16xf32>
    %65 = arith.mulf %60, %64 : vector<8x16xf32>
    %66 = vector.extract_strided_slice %12 {offsets = [24, 0], sizes = [8, 64], strides = [1, 1]} : vector<64x64xf32> to vector<8x64xf32>
    %cst_13 = arith.constant dense<0.000000e+00> : vector<8x64xf32>
    %67 = tpu.matmul %65, %0, %cst_13 {dimension_numbers = #tpu.dot_dimension_numbers<[1], [0], [0], [1], [0, 0, 1, 1], [], []>} : vector<8x16xf32>, vector<16x64xf32>, vector<8x64xf32> -> vector<8x64xf32>
    %68 = arith.addf %66, %67 : vector<8x64xf32>
    %69 = math.tanh %68 : vector<8x64xf32>
    %70 = vector.broadcast %3 : vector<1x64xf32> to vector<8x64xf32>
    %71 = arith.mulf %69, %70 : vector<8x64xf32>
    %72 = vector.broadcast %4 : vector<1x64xf32> to vector<8x64xf32>
    %73 = arith.addf %71, %72 : vector<8x64xf32>
    %74 = vector.extract_strided_slice %73 {offsets = [0, 0], sizes = [8, 16], strides = [1, 1]} : vector<8x64xf32> to vector<8x16xf32>
    %75 = vector.extract_strided_slice %73 {offsets = [0, 16], sizes = [8, 16], strides = [1, 1]} : vector<8x64xf32> to vector<8x16xf32>
    %76 = vector.extract_strided_slice %73 {offsets = [0, 32], sizes = [8, 16], strides = [1, 1]} : vector<8x64xf32> to vector<8x16xf32>
    %77 = vector.extract_strided_slice %73 {offsets = [0, 48], sizes = [8, 16], strides = [1, 1]} : vector<8x64xf32> to vector<8x16xf32>
    %78 = arith.mulf %75, %63 : vector<8x16xf32>
    %79 = arith.mulf %74, %76 : vector<8x16xf32>
    %80 = arith.addf %78, %79 : vector<8x16xf32>
    %81 = math.tanh %80 : vector<8x16xf32>
    %82 = arith.mulf %77, %81 : vector<8x16xf32>
    %83 = vector.extract_strided_slice %12 {offsets = [32, 0], sizes = [8, 64], strides = [1, 1]} : vector<64x64xf32> to vector<8x64xf32>
    %cst_14 = arith.constant dense<0.000000e+00> : vector<8x64xf32>
    %84 = tpu.matmul %82, %0, %cst_14 {dimension_numbers = #tpu.dot_dimension_numbers<[1], [0], [0], [1], [0, 0, 1, 1], [], []>} : vector<8x16xf32>, vector<16x64xf32>, vector<8x64xf32> -> vector<8x64xf32>
    %85 = arith.addf %83, %84 : vector<8x64xf32>
    %86 = math.tanh %85 : vector<8x64xf32>
    %87 = vector.broadcast %3 : vector<1x64xf32> to vector<8x64xf32>
    %88 = arith.mulf %86, %87 : vector<8x64xf32>
    %89 = vector.broadcast %4 : vector<1x64xf32> to vector<8x64xf32>
    %90 = arith.addf %88, %89 : vector<8x64xf32>
    %91 = vector.extract_strided_slice %90 {offsets = [0, 0], sizes = [8, 16], strides = [1, 1]} : vector<8x64xf32> to vector<8x16xf32>
    %92 = vector.extract_strided_slice %90 {offsets = [0, 16], sizes = [8, 16], strides = [1, 1]} : vector<8x64xf32> to vector<8x16xf32>
    %93 = vector.extract_strided_slice %90 {offsets = [0, 32], sizes = [8, 16], strides = [1, 1]} : vector<8x64xf32> to vector<8x16xf32>
    %94 = vector.extract_strided_slice %90 {offsets = [0, 48], sizes = [8, 16], strides = [1, 1]} : vector<8x64xf32> to vector<8x16xf32>
    %95 = arith.mulf %92, %80 : vector<8x16xf32>
    %96 = arith.mulf %91, %93 : vector<8x16xf32>
    %97 = arith.addf %95, %96 : vector<8x16xf32>
    %98 = math.tanh %97 : vector<8x16xf32>
    %99 = arith.mulf %94, %98 : vector<8x16xf32>
    %100 = vector.extract_strided_slice %12 {offsets = [40, 0], sizes = [8, 64], strides = [1, 1]} : vector<64x64xf32> to vector<8x64xf32>
    %cst_15 = arith.constant dense<0.000000e+00> : vector<8x64xf32>
    %101 = tpu.matmul %99, %0, %cst_15 {dimension_numbers = #tpu.dot_dimension_numbers<[1], [0], [0], [1], [0, 0, 1, 1], [], []>} : vector<8x16xf32>, vector<16x64xf32>, vector<8x64xf32> -> vector<8x64xf32>
    %102 = arith.addf %100, %101 : vector<8x64xf32>
    %103 = math.tanh %102 : vector<8x64xf32>
    %104 = vector.broadcast %3 : vector<1x64xf32> to vector<8x64xf32>
    %105 = arith.mulf %103, %104 : vector<8x64xf32>
    %106 = vector.broadcast %4 : vector<1x64xf32> to vector<8x64xf32>
    %107 = arith.addf %105, %106 : vector<8x64xf32>
    %108 = vector.extract_strided_slice %107 {offsets = [0, 0], sizes = [8, 16], strides = [1, 1]} : vector<8x64xf32> to vector<8x16xf32>
    %109 = vector.extract_strided_slice %107 {offsets = [0, 16], sizes = [8, 16], strides = [1, 1]} : vector<8x64xf32> to vector<8x16xf32>
    %110 = vector.extract_strided_slice %107 {offsets = [0, 32], sizes = [8, 16], strides = [1, 1]} : vector<8x64xf32> to vector<8x16xf32>
    %111 = vector.extract_strided_slice %107 {offsets = [0, 48], sizes = [8, 16], strides = [1, 1]} : vector<8x64xf32> to vector<8x16xf32>
    %112 = arith.mulf %109, %97 : vector<8x16xf32>
    %113 = arith.mulf %108, %110 : vector<8x16xf32>
    %114 = arith.addf %112, %113 : vector<8x16xf32>
    %115 = math.tanh %114 : vector<8x16xf32>
    %116 = arith.mulf %111, %115 : vector<8x16xf32>
    %117 = vector.extract_strided_slice %12 {offsets = [48, 0], sizes = [8, 64], strides = [1, 1]} : vector<64x64xf32> to vector<8x64xf32>
    %cst_16 = arith.constant dense<0.000000e+00> : vector<8x64xf32>
    %118 = tpu.matmul %116, %0, %cst_16 {dimension_numbers = #tpu.dot_dimension_numbers<[1], [0], [0], [1], [0, 0, 1, 1], [], []>} : vector<8x16xf32>, vector<16x64xf32>, vector<8x64xf32> -> vector<8x64xf32>
    %119 = arith.addf %117, %118 : vector<8x64xf32>
    %120 = math.tanh %119 : vector<8x64xf32>
    %121 = vector.broadcast %3 : vector<1x64xf32> to vector<8x64xf32>
    %122 = arith.mulf %120, %121 : vector<8x64xf32>
    %123 = vector.broadcast %4 : vector<1x64xf32> to vector<8x64xf32>
    %124 = arith.addf %122, %123 : vector<8x64xf32>
    %125 = vector.extract_strided_slice %124 {offsets = [0, 0], sizes = [8, 16], strides = [1, 1]} : vector<8x64xf32> to vector<8x16xf32>
    %126 = vector.extract_strided_slice %124 {offsets = [0, 16], sizes = [8, 16], strides = [1, 1]} : vector<8x64xf32> to vector<8x16xf32>
    %127 = vector.extract_strided_slice %124 {offsets = [0, 32], sizes = [8, 16], strides = [1, 1]} : vector<8x64xf32> to vector<8x16xf32>
    %128 = vector.extract_strided_slice %124 {offsets = [0, 48], sizes = [8, 16], strides = [1, 1]} : vector<8x64xf32> to vector<8x16xf32>
    %129 = arith.mulf %126, %114 : vector<8x16xf32>
    %130 = arith.mulf %125, %127 : vector<8x16xf32>
    %131 = arith.addf %129, %130 : vector<8x16xf32>
    %132 = math.tanh %131 : vector<8x16xf32>
    %133 = arith.mulf %128, %132 : vector<8x16xf32>
    %134 = vector.extract_strided_slice %12 {offsets = [56, 0], sizes = [8, 64], strides = [1, 1]} : vector<64x64xf32> to vector<8x64xf32>
    %cst_17 = arith.constant dense<0.000000e+00> : vector<8x64xf32>
    %135 = tpu.matmul %133, %0, %cst_17 {dimension_numbers = #tpu.dot_dimension_numbers<[1], [0], [0], [1], [0, 0, 1, 1], [], []>} : vector<8x16xf32>, vector<16x64xf32>, vector<8x64xf32> -> vector<8x64xf32>
    %136 = arith.addf %134, %135 : vector<8x64xf32>
    %137 = math.tanh %136 : vector<8x64xf32>
    %138 = vector.broadcast %3 : vector<1x64xf32> to vector<8x64xf32>
    %139 = arith.mulf %137, %138 : vector<8x64xf32>
    %140 = vector.broadcast %4 : vector<1x64xf32> to vector<8x64xf32>
    %141 = arith.addf %139, %140 : vector<8x64xf32>
    %142 = vector.extract_strided_slice %141 {offsets = [0, 0], sizes = [8, 16], strides = [1, 1]} : vector<8x64xf32> to vector<8x16xf32>
    %143 = vector.extract_strided_slice %141 {offsets = [0, 16], sizes = [8, 16], strides = [1, 1]} : vector<8x64xf32> to vector<8x16xf32>
    %144 = vector.extract_strided_slice %141 {offsets = [0, 32], sizes = [8, 16], strides = [1, 1]} : vector<8x64xf32> to vector<8x16xf32>
    %145 = vector.extract_strided_slice %141 {offsets = [0, 48], sizes = [8, 16], strides = [1, 1]} : vector<8x64xf32> to vector<8x16xf32>
    %146 = arith.mulf %143, %131 : vector<8x16xf32>
    %147 = arith.mulf %142, %144 : vector<8x16xf32>
    %148 = arith.addf %146, %147 : vector<8x16xf32>
    %149 = math.tanh %148 : vector<8x16xf32>
    %150 = arith.mulf %145, %149 : vector<8x16xf32>
    %151 = tpu.concatenate %31, %48, %65, %82, %99, %116, %133, %150 in 1 : vector<8x16xf32>, vector<8x16xf32>, vector<8x16xf32>, vector<8x16xf32>, vector<8x16xf32>, vector<8x16xf32>, vector<8x16xf32>, vector<8x16xf32> -> vector<8x128xf32>
    %cst_18 = arith.constant dense<0.000000e+00> : vector<8x8xf32>
    %152 = tpu.matmul %151, %6, %cst_18 {dimension_numbers = #tpu.dot_dimension_numbers<[1], [0], [0], [1], [0, 0, 1, 1], [], []>} : vector<8x128xf32>, vector<128x8xf32>, vector<8x8xf32> -> vector<8x8xf32>
    %153 = vector.broadcast %5 : vector<1x8xf32> to vector<8x8xf32>
    %154 = arith.addf %152, %153 : vector<8x8xf32>
    %155 = tpu.concatenate %154, %150, %148 in 1 : vector<8x8xf32>, vector<8x16xf32>, vector<8x16xf32> -> vector<8x40xf32>
    %c0_19 = arith.constant 0 : index
    %c0_20 = arith.constant 0 : index
    %156 = vector.load %arg2[%c0_19, %c0_20] : memref<8x40xf32, #tpu.memory_space<vmem>>, vector<8x40xf32>
    tpu.vector_store %arg2[%c0_19, %c0_20], %155 {strides = array<i32>} : memref<8x40xf32, #tpu.memory_space<vmem>>, vector<8x40xf32>,
    return
  }
}

</mosaic_0001>

<bundles_post_ra>
// kernel: tpu_custom_call.1
= control target key start
LH: loop header
LB: loop body
LE: loop exit
PB: predicated region body
PF: predicated region fallthrough
CT: control target
= control target key end

     0   :  { %v638_v3 = vmov 0   ;;  %s883_s0 = inlined_call_operand.vmem [shape: f32[64,1], index: 0, kind: input, shape index: {}]   ;;  %s884_s1 = inlined_call_operand.vmem [shape: f32[160,64], index: 1, kind: input, shape index: {}]   ;;  %s885_s2 = inlined_call_operand.hbm [shape: f32[8,40], index: 2, kind: output, shape index: {}]  }
   0x1   :  { %v668_v0 = vld [vmem:[%s884_s1 + $0x8] sm:$0xff]  ;;  %v673_v1 = vld [vmem:[%s884_s1] sm:$0xff]  ;;  %572 = vset.pattern.permute.xlu0 %v638_v3  ;;  %573 = vset.pattern.permute.xlu2 %v638_v3 }
   0x2   :  { %v35_v2 = vld [vmem:[%s883_s0] sm:$0xff]  ;;  %119 = vmatpush.msra.mxu1 %v668_v0 }
   0x3   :  { %45 = vperm.xlu0 %572, %v35_v2  }
   0x4   :  { %7 = vsyncpa [#allocation3], 0  ;;  %120 = vmatpush.msra.mxu1 %v673_v1  ;;  %213 = vmatpush.msra.mxu2 %v668_v0  ;;  %v639_v4 = vmov 0.0   ;;  %v695_v5 = vld [vmem:[%s884_s1 + $0x10] ss:$0 sm:$0xff]  ;;  %s640_s23 = smov 96  }
   0x5   :  { %121 = vmatmul.f32.vlgmr.msra.gmra.mxu1 %v639_v4  ;;  %574 = vset.pattern.permute.xlu1 %v638_v3  ;;  %v701_v8 = vld [vmem:[%s884_s1 + $0x11] ss:$0 sm:$0xff]  ;;  %v707_v12 = vld [vmem:[%s884_s1 + $0x12] ss:$0 sm:$0xff]  ;;  %v712_v13 = vld [vmem:[%s884_s1 + $0x13] ss:$0 sm:$0xff] }
   0x6   :  { %167 = vmatpush.msrb.mxu1 %v668_v0  ;;  %214 = vmatpush.msra.mxu2 %v673_v1  ;;  %s641_s24 = smov 16   ;;  %s642_s25 = smov 32   ;;  %v36_v25 = vld [vmem:[%s883_s0 + $0x8] sm:$0xff]  ;;  %vm101_vm0 = vcmask 130048   ;;  %v37_v43 = vld [vmem:[%s883_s0 + $0x10] sm:$0xff]  ;;  %v38_v55 = vld [vmem:[%s883_s0 + $0x18] sm:$0xff] }
   0x7   :  { %259 = vmatpush.msra.mxu3 %v668_v0  ;;  %s643_s26 = smov 80   ;;  %s645_s13 = smov 48   ;;  %vm491_vm1 = vcmask 261120   ;;  %vm493_vm2 = vcmask 392192   ;;  %vm495_vm3 = vcmask 523264   ;;  %vm497_vm4 = vcmask 654336  }
   0x8   :  { %305 = vmatpush.msrb.mxu2 %v668_v0  ;;  %168 = vmatpush.msrb.mxu1 %v673_v1  ;;  %s646_s14 = smov 8   ;;  %s647_s7 = smov 88   ;;  %vm499_vm5 = vcmask 785408   ;;  %vm501_vm6 = vcmask 916480   ;;  %vm531_vm7 = vcmask 64512   ;;  %vm533_vm8 = vcmask 195584  }
   0x9   :  { %260 = vmatpush.msra.mxu3 %v673_v1  ;;  %s648_s8 = smov 64   ;;  %s649_s22 = smov [#allocation2]   ;;  %vm535_vm9 = vcmask 326656  }
   0xa   :  { %306 = vmatpush.msrb.mxu2 %v673_v1  ;;  %351 = vmatpush.msra.mxu1 %v668_v0 }
   0xb   :  { %443 = vmatpush.msrb.mxu3 %v668_v0 }
   0xc   :  { %352 = vmatpush.msra.mxu1 %v673_v1 }
   0xd   :  { %444 = vmatpush.msrb.mxu3 %v673_v1 }
  0x75   :  { %v46_v6 = vpop.permute.xlu0 %45 }
  0x76   :  { %v84_v7 = vmul.f32 %v695_v5, %v46_v6 }
  0x78   :  { %v93_v9 = vadd.f32 %v701_v8, %v84_v7 }
  0x82   :  { %v122_v10 = vpop.f32.mrf.mxu1 }
  0x83   :  { %v125_v11 = vadd.f32 %v122_v10, %v93_v9 }
  0x85   :  { %580 = vtanh.f32 %v125_v11  ;;  %v39_v11 = vld [vmem:[%s883_s0 + $0x20] sm:$0xff] }
  0x8b   :  { %v581_v14 = vpop.eup %580 }
  0x8c   :  { %v128_v15 = vmul.f32 %v581_v14, %v707_v12 }
  0x8e   :  { %v130_v16 = vadd.f32 %v712_v13, %v128_v15 }
  0x90   :  { %133 = vrot.lane.b32.xlu0 %v130_v16, %s640_s23  ;;  %v131_v19 = vmul.f32 0.0, %v130_v16 }
 0x102   :  { %v134_v17 = vpop.permute.xlu0 %133 }
 0x103   :  { %v136_v18 = vmul.f32 %v134_v17, %v130_v16 }
 0x105   :  { %138 = vrot.lane.b32.xlu1 %v136_v18, %s641_s24 }
 0x177   :  { %v139_v20 = vpop.permute.xlu1 %138 }
 0x178   :  { %v141_v21 = vadd.f32 %v139_v20, %v131_v19 }
 0x17a   :  { %582 = vtanh.f32 %v141_v21 }
 0x180   :  { %v583_v22 = vpop.eup %582 }
 0x181   :  { %144 = vrot.lane.b32.xlu1 %v583_v22, %s642_s25 }
 0x1f3   :  { %v145_v23 = vpop.permute.xlu1 %144 }
 0x1f4   :  { %v147_v24 = vmul.f32 %v145_v23, %v130_v16 }
 0x1f6   :  { %149 = vrot.lane.b32.xlu2 %v147_v24, %s643_s26 }
 0x1fe   :  { %50 = vperm.xlu2 %573, %v36_v25  }
 0x250   :  { %v723_v26 = vpop.permute.xlu2 %149 }
 0x251   :  { %553 = vmatmul.msk.f32.vlgmr.msrb.gmra.mxu1 %vm101_vm0, %v723_v26 }
 0x258   :  { %v51_v27 = vpop.permute.xlu2 %50 }
 0x259   :  { %v85_v28 = vmul.f32 %v695_v5, %v51_v27 }
 0x25b   :  { %v94_v29 = vadd.f32 %v701_v8, %v85_v28 }
 0x2ce   :  { %v170_v30 = vpop.f32.mrf.mxu1 }
 0x2cf   :  { %v173_v31 = vadd.f32 %v170_v30, %v94_v29 }
 0x2d1   :  { %584 = vtanh.f32 %v173_v31 }
 0x2d7   :  { %v585_v32 = vpop.eup %584 }
 0x2d8   :  { %v175_v33 = vmul.f32 %v585_v32, %v707_v12  ;;  %v40_v32 = vld [vmem:[%s883_s0 + $0x28] sm:$0xff] }
 0x2da   :  { %v176_v34 = vadd.f32 %v712_v13, %v175_v33 }
 0x2dc   :  { %179 = vrot.lane.b32.xlu0 %v176_v34, %s640_s23  ;;  %v177_v37 = vmul.f32 %v176_v34, %v141_v21 }
 0x34e   :  { %v180_v35 = vpop.permute.xlu0 %179 }
 0x34f   :  { %v182_v36 = vmul.f32 %v180_v35, %v176_v34 }
 0x351   :  { %184 = vrot.lane.b32.xlu1 %v182_v36, %s641_s24 }
 0x359   :  { %55 = vperm.xlu1 %574, %v37_v43  }
 0x3c3   :  { %v185_v38 = vpop.permute.xlu1 %184 }
 0x3c4   :  { %v187_v39 = vadd.f32 %v185_v38, %v177_v37 }
 0x3c6   :  { %586 = vtanh.f32 %v187_v39 }
 0x3cb   :  { %v56_v45 = vpop.permute.xlu1 %55 }
 0x3cc   :  { %v587_v40 = vpop.eup %586  ;;  %v86_v46 = vmul.f32 %v695_v5, %v56_v45 }
 0x3cd   :  { %190 = vrot.lane.b32.xlu2 %v587_v40, %s642_s25 }
 0x3ce   :  { %v95_v47 = vadd.f32 %v701_v8, %v86_v46 }
 0x427   :  { %v191_v41 = vpop.permute.xlu2 %190 }
 0x428   :  { %v734_v42 = vmul.f32 %v191_v41, %v176_v34 }
 0x42a   :  { %195 = vrot.lane.b32.xlu0 %v734_v42, %s643_s26 }
 0x49c   :  { %v196_v44 = vpop.permute.xlu0 %195 }
 0x49d   :  { %554 = vmatmul.msk.f32.vlgmr.msra.gmra.mxu2 %vm101_vm0, %v196_v44 }
 0x49e   :  { %397 = vmatpush.msra.mxu2 %v668_v0 }
 0x4a0   :  { %398 = vmatpush.msra.mxu2 %v673_v1 }
 0x520   :  { %v216_v48 = vpop.f32.mrf.mxu2 }
 0x521   :  { %v219_v49 = vadd.f32 %v216_v48, %v95_v47 }
 0x523   :  { %588 = vtanh.f32 %v219_v49 }
 0x529   :  { %v589_v50 = vpop.eup %588 }
 0x52a   :  { %v221_v51 = vmul.f32 %v589_v50, %v707_v12 }
 0x52c   :  { %v222_v52 = vadd.f32 %v712_v13, %v221_v51  ;;  %v41_v51 = vld [vmem:[%s883_s0 + $0x30] sm:$0xff] }
 0x52e   :  { %225 = vrot.lane.b32.xlu2 %v222_v52, %s640_s23  ;;  %v223_v56 = vmul.f32 %v222_v52, %v187_v39 }
 0x588   :  { %v226_v53 = vpop.permute.xlu2 %225 }
 0x589   :  { %v228_v54 = vmul.f32 %v226_v53, %v222_v52 }
 0x58b   :  { %230 = vrot.lane.b32.xlu0 %v228_v54, %s641_s24 }
 0x593   :  { %60 = vperm.xlu0 %572, %v38_v55  }
 0x5fd   :  { %v231_v57 = vpop.permute.xlu0 %230 }
 0x5fe   :  { %v233_v58 = vadd.f32 %v231_v57, %v223_v56 }
 0x600   :  { %590 = vtanh.f32 %v233_v58 }
 0x605   :  { %v61_v63 = vpop.permute.xlu0 %60 }
 0x606   :  { %v591_v59 = vpop.eup %590  ;;  %v87_v0 = vmul.f32 %v695_v5, %v61_v63 }
 0x607   :  { %236 = vrot.lane.b32.xlu1 %v591_v59, %s642_s25 }
 0x608   :  { %v96_v1 = vadd.f32 %v701_v8, %v87_v0 }
 0x679   :  { %v237_v60 = vpop.permute.xlu1 %236 }
 0x67a   :  { %v754_v61 = vmul.f32 %v237_v60, %v222_v52 }
 0x67c   :  { %241 = vrot.lane.b32.xlu2 %v754_v61, %s643_s26 }
 0x6d6   :  { %v242_v62 = vpop.permute.xlu2 %241 }
 0x6d7   :  { %555 = vmatmul.msk.f32.vlgmr.msra.gmra.mxu3 %vm101_vm0, %v242_v62 }
 0x75a   :  { %v262_v2 = vpop.f32.mrf.mxu3 }
 0x75b   :  { %v265_v3 = vadd.f32 %v262_v2, %v96_v1 }
 0x75d   :  { %592 = vtanh.f32 %v265_v3 }
 0x763   :  { %v593_v4 = vpop.eup %592 }
 0x764   :  { %v267_v6 = vmul.f32 %v593_v4, %v707_v12 }
 0x766   :  { %v268_v7 = vadd.f32 %v712_v13, %v267_v6 }
 0x768   :  { %271 = vrot.lane.b32.xlu1 %v268_v7, %s640_s23  ;;  %v269_v14 = vmul.f32 %v268_v7, %v233_v58 }
 0x7da   :  { %v272_v9 = vpop.permute.xlu1 %271 }
 0x7db   :  { %v274_v10 = vmul.f32 %v272_v9, %v268_v7 }
 0x7dd   :  { %276 = vrot.lane.b32.xlu2 %v274_v10, %s641_s24 }
 0x7e5   :  { %65 = vperm.xlu2 %573, %v39_v11  }
 0x837   :  { %v277_v15 = vpop.permute.xlu2 %276 }
 0x838   :  { %v279_v16 = vadd.f32 %v277_v15, %v269_v14 }
 0x83a   :  { %594 = vtanh.f32 %v279_v16 }
 0x83f   :  { %v66_v21 = vpop.permute.xlu2 %65 }
 0x840   :  { %v595_v17 = vpop.eup %594  ;;  %v88_v22 = vmul.f32 %v695_v5, %v66_v21 }
 0x841   :  { %282 = vrot.lane.b32.xlu0 %v595_v17, %s642_s25 }
 0x842   :  { %v97_v23 = vadd.f32 %v701_v8, %v88_v22 }
 0x8b3   :  { %v283_v18 = vpop.permute.xlu0 %282 }
 0x8b4   :  { %v769_v19 = vmul.f32 %v283_v18, %v268_v7  ;;  %v42_v7 = vld [vmem:[%s883_s0 + $0x38] sm:$0xff]  ;;  %s644_s0 = smov 112  }
 0x8b6   :  { %287 = vrot.lane.b32.xlu1 %v769_v19, %s643_s26 }
 0x928   :  { %v288_v20 = vpop.permute.xlu1 %287 }
 0x929   :  { %556 = vmatmul.msk.f32.vlgmr.msrb.gmra.mxu2 %vm101_vm0, %v288_v20 }
 0x9ac   :  { %v308_v24 = vpop.f32.mrf.mxu2 }
 0x9ad   :  { %v311_v25 = vadd.f32 %v308_v24, %v97_v23 }
 0x9af   :  { %596 = vtanh.f32 %v311_v25 }
 0x9b5   :  { %v597_v27 = vpop.eup %596 }
 0x9b6   :  { %v313_v28 = vmul.f32 %v597_v27, %v707_v12 }
 0x9b8   :  { %v314_v29 = vadd.f32 %v712_v13, %v313_v28 }
 0x9ba   :  { %317 = vrot.lane.b32.xlu0 %v314_v29, %s640_s23  ;;  %v315_v33 = vmul.f32 %v314_v29, %v279_v16 }
 0xa2c   :  { %v318_v30 = vpop.permute.xlu0 %317 }
 0xa2d   :  { %v320_v31 = vmul.f32 %v318_v30, %v314_v29  ;;  %v32_v30 = vld [vmem:[%s884_s1 + $0x88] sm:$0xff] }
 0xa2f   :  { %322 = vrot.lane.b32.xlu1 %v320_v31, %s641_s24  ;;  %v31_v31 = vld [vmem:[%s884_s1 + $0x80] sm:$0xff] }
 0xa37   :  { %70 = vperm.xlu1 %574, %v40_v32   ;;  %v30_v32 = vld [vmem:[%s884_s1 + $0x78] sm:$0xff] }
 0xaa1   :  { %v323_v34 = vpop.permute.xlu1 %322 }
 0xaa2   :  { %v325_v35 = vadd.f32 %v323_v34, %v315_v33  ;;  %v29_v33 = vld [vmem:[%s884_s1 + $0x70] sm:$0xff]  ;;  %v28_v34 = vld [vmem:[%s884_s1 + $0x68] sm:$0xff] }
 0xaa4   :  { %598 = vtanh.f32 %v325_v35 }
 0xaa9   :  { %v71_v40 = vpop.permute.xlu1 %70 }
 0xaaa   :  { %v599_v36 = vpop.eup %598  ;;  %v89_v41 = vmul.f32 %v695_v5, %v71_v40  ;;  %v24_v40 = vld [vmem:[%s884_s1 + $0x48] sm:$0xff] }
 0xaab   :  { %328 = vrot.lane.b32.xlu2 %v599_v36, %s642_s25  ;;  %v26_v36 = vld [vmem:[%s884_s1 + $0x58] sm:$0xff] }
 0xaac   :  { %v98_v43 = vadd.f32 %v701_v8, %v89_v41  ;;  %v23_v41 = vld [vmem:[%s884_s1 + $0x40] sm:$0xff] }
 0xb05   :  { %v329_v37 = vpop.permute.xlu2 %328 }
 0xb06   :  { %v784_v38 = vmul.f32 %v329_v37, %v314_v29 }
 0xb08   :  { %333 = vrot.lane.b32.xlu0 %v784_v38, %s643_s26 }
 0xb7a   :  { %v334_v39 = vpop.permute.xlu0 %333 }
 0xb7b   :  { %557 = vmatmul.msk.f32.vlgmr.msra.gmra.mxu1 %vm101_vm0, %v334_v39  ;;  %v25_v39 = vld [vmem:[%s884_s1 + $0x50] sm:$0xff] }
 0xbf8   :  { %v354_v44 = vpop.f32.mrf.mxu1 }
 0xbf9   :  { %v357_v45 = vadd.f32 %v354_v44, %v98_v43  ;;  %v22_v43 = vld [vmem:[%s884_s1 + $0x38] sm:$0xff]  ;;  %v21_v44 = vld [vmem:[%s884_s1 + $0x30] sm:$0xff] }
 0xbfb   :  { %600 = vtanh.f32 %v357_v45  ;;  %v20_v45 = vld [vmem:[%s884_s1 + $0x28] sm:$0xff] }
 0xc01   :  { %v601_v46 = vpop.eup %600 }
 0xc02   :  { %v359_v47 = vmul.f32 %v601_v46, %v707_v12  ;;  %v19_v46 = vld [vmem:[%s884_s1 + $0x20] sm:$0xff] }
 0xc04   :  { %v360_v48 = vadd.f32 %v712_v13, %v359_v47 }
 0xc06   :  { %363 = vrot.lane.b32.xlu2 %v360_v48, %s640_s23  ;;  %v361_v52 = vmul.f32 %v360_v48, %v325_v35  ;;  %v27_v35 = vld [vmem:[%s884_s1 + $0x60] sm:$0xff] }
 0xc60   :  { %v364_v49 = vpop.permute.xlu2 %363 }
 0xc61   :  { %v366_v50 = vmul.f32 %v364_v49, %v360_v48 }
 0xc63   :  { %368 = vrot.lane.b32.xlu0 %v366_v50, %s641_s24 }
 0xc6b   :  { %75 = vperm.xlu0 %572, %v41_v51  }
 0xcd5   :  { %v369_v53 = vpop.permute.xlu0 %368 }
 0xcd6   :  { %v371_v54 = vadd.f32 %v369_v53, %v361_v52 }
 0xcd8   :  { %602 = vtanh.f32 %v371_v54 }
 0xcdd   :  { %v76_v59 = vpop.permute.xlu0 %75 }
 0xcde   :  { %v603_v55 = vpop.eup %602  ;;  %v90_v60 = vmul.f32 %v695_v5, %v76_v59 }
 0xcdf   :  { %374 = vrot.lane.b32.xlu1 %v603_v55, %s642_s25 }
 0xce0   :  { %v99_v62 = vadd.f32 %v701_v8, %v90_v60 }
 0xd51   :  { %v375_v56 = vpop.permute.xlu1 %374 }
 0xd52   :  { %v377_v57 = vmul.f32 %v375_v56, %v360_v48 }
 0xd54   :  { %379 = vrot.lane.b32.xlu2 %v377_v57, %s643_s26 }
 0xdae   :  { %v380_v58 = vpop.permute.xlu2 %379 }
 0xdaf   :  { %558 = vmatmul.msk.f32.vlgmr.msra.gmra.mxu2 %vm101_vm0, %v380_v58 }
 0xe32   :  { %v400_v63 = vpop.f32.mrf.mxu2 }
 0xe33   :  { %v403_v0 = vadd.f32 %v400_v63, %v99_v62 }
 0xe35   :  { %604 = vtanh.f32 %v403_v0 }
 0xe3b   :  { %v605_v1 = vpop.eup %604 }
 0xe3c   :  { %v405_v2 = vmul.f32 %v605_v1, %v707_v12 }
 0xe3e   :  { %v406_v3 = vadd.f32 %v712_v13, %v405_v2 }
 0xe40   :  { %409 = vrot.lane.b32.xlu1 %v406_v3, %s640_s23  ;;  %v407_v9 = vmul.f32 %v406_v3, %v371_v54 }
 0xeb2   :  { %v410_v4 = vpop.permute.xlu1 %409 }
 0xeb3   :  { %v412_v6 = vmul.f32 %v410_v4, %v406_v3 }
 0xeb5   :  { %414 = vrot.lane.b32.xlu2 %v412_v6, %s641_s24 }
 0xebd   :  { %80 = vperm.xlu2 %573, %v42_v7  }
 0xf0f   :  { %v415_v10 = vpop.permute.xlu2 %414 }
 0xf10   :  { %v417_v11 = vadd.f32 %v415_v10, %v407_v9 }
 0xf12   :  { %606 = vtanh.f32 %v417_v11 }
 0xf17   :  { %v81_v18 = vpop.permute.xlu2 %80 }
 0xf18   :  { %v607_v14 = vpop.eup %606  ;;  %v91_v20 = vmul.f32 %v695_v5, %v81_v18 }
 0xf19   :  { %420 = vrot.lane.b32.xlu0 %v607_v14, %s642_s25 }
 0xf1a   :  { %v100_v21 = vadd.f32 %v701_v8, %v91_v20 }
 0xf8b   :  { %v421_v15 = vpop.permute.xlu0 %420 }
 0xf8c   :  { %v423_v16 = vmul.f32 %v421_v15, %v406_v3 }
 0xf8e   :  { %425 = vrot.lane.b32.xlu1 %v423_v16, %s643_s26  ;;  %s544_s26 = sshll.u32 %s885_s2, 4  ;;  %s545_s26 = int_to_ptr.hbm [resolvable:$true] %s544_s26 }
0x1000   :  { %v426_v17 = vpop.permute.xlu1 %425 }
0x1001   :  { %559 = vmatmul.msk.f32.vlgmr.msrb.gmra.mxu3 %vm101_vm0, %v426_v17 }
0x1084   :  { %v446_v22 = vpop.f32.mrf.mxu3 }
0x1085   :  { %v449_v23 = vadd.f32 %v446_v22, %v100_v21 }
0x1087   :  { %608 = vtanh.f32 %v449_v23 }
0x108d   :  { %v609_v24 = vpop.eup %608 }
0x108e   :  { %v451_v25 = vmul.f32 %v609_v24, %v707_v12 }
0x1090   :  { %v452_v27 = vadd.f32 %v712_v13, %v451_v25 }
0x1092   :  { %455 = vrot.lane.b32.xlu0 %v452_v27, %s640_s23  ;;  %v453_v5 = vmul.f32 %v452_v27, %v417_v11 }
0x109a   :  { %471 = vrot.lane.b32.xlu0 %v734_v42, %s640_s23  ;;  %v34_v42 = vld [vmem:[%s884_s1 + $0x98] sm:$0xff]  ;;  %s542_s23 = sshll.u32 %s649_s22, 4  ;;  %s543_s23 = int_to_ptr.vmem [resolvable:$true] %s542_s23 }
0x109b   :  { %504 = vmatpush.msra.mxu0 %v34_v42 }
0x10a2   :  { %480 = vrot.lane.b32.xlu0 %v377_v57, %s642_s25 }
0x1104   :  { %v456_v28 = vpop.permute.xlu0 %455 }
0x1105   :  { %v458_v29 = vmul.f32 %v456_v28, %v452_v27 }
0x1107   :  { %460 = vrot.lane.b32.xlu1 %v458_v29, %s641_s24 }
0x110c   :  { %v472_v47 = vpop.permute.xlu0 %471 }
0x110d   :  { %v490_v49 = vsel %vm101_vm0, %v723_v26, %v472_v47  ;;  %v579_v26 = vld [vmem:[%s884_s1 + $0x14] ss:$0 sm:$0xff] }
0x110f   :  { %474 = vrot.lane.b32.xlu1 %v754_v61, %s644_s0  ;;  %v33_v61 = vld [vmem:[%s884_s1 + $0x90] sm:$0xff] }
0x1110   :  { %505 = vmatpush.msra.mxu0 %v33_v61 }
0x1112   :  { %506 = vmatpush.msra.mxu0 %v32_v30 }
0x1114   :  { %507 = vmatpush.msra.mxu0 %v31_v31  ;;  %v481_v54 = vpop.permute.xlu0 %480 }
0x1116   :  { %508 = vmatpush.msra.mxu0 %v30_v32 }
0x1117   :  { %483 = vrot.lane.b32.xlu1 %v423_v16, %s645_s13 }
0x1118   :  { %509 = vmatpush.msra.mxu0 %v29_v33 }
0x111a   :  { %510 = vmatpush.msra.mxu0 %v28_v34 }
0x111c   :  { %511 = vmatpush.msra.mxu0 %v27_v35 }
0x111e   :  { %512 = vmatpush.msra.mxu0 %v26_v36 }
0x1120   :  { %513 = vmatpush.msra.mxu0 %v25_v39 }
0x1122   :  { %514 = vmatpush.msra.mxu0 %v24_v40 }
0x1124   :  { %515 = vmatpush.msra.mxu0 %v23_v41 }
0x1126   :  { %516 = vmatpush.msra.mxu0 %v22_v43 }
0x1128   :  { %517 = vmatpush.msra.mxu0 %v21_v44 }
0x112a   :  { %518 = vmatpush.msra.mxu0 %v20_v45 }
0x112c   :  { %519 = vmatpush.msra.mxu0 %v19_v46 }
0x1179   :  { %v461_v8 = vpop.permute.xlu1 %460 }
0x117a   :  { %v463_v12 = vadd.f32 %v461_v8, %v453_v5 }
0x117c   :  { %610 = vtanh.f32 %v463_v12  ;;  %528 = vrot.lane.b32.xlu1 %v463_v12, %s646_s14 }
0x1181   :  { %v475_v48 = vpop.permute.xlu1 %474 }
0x1182   :  { %v611_v13 = vpop.eup %610  ;;  %v492_v50 = vsel %vm491_vm1, %v490_v49, %v475_v48 }
0x1183   :  { %466 = vrot.lane.b32.xlu2 %v611_v13, %s642_s25  ;;  %v494_v52 = vsel %vm493_vm2, %v492_v50, %v769_v19 }
0x1189   :  { %v484_v56 = vpop.permute.xlu1 %483 }
0x118b   :  { %477 = vrot.lane.b32.xlu2 %v784_v38, %s641_s24 }
0x11dd   :  { %v467_v37 = vpop.permute.xlu2 %466 }
0x11de   :  { %v469_v38 = vmul.f32 %v467_v37, %v452_v27 }
0x11e0   :  { %524 = vrot.lane.b32.xlu0 %v469_v38, %s647_s7  ;;  %487 = vrot.lane.b32.xlu2 %v469_v38, %s648_s8 }
0x11e5   :  { %v478_v51 = vpop.permute.xlu2 %477 }
0x11e6   :  { %v496_v53 = vsel %vm495_vm3, %v494_v52, %v478_v51 }
0x11e7   :  { %v498_v55 = vsel %vm497_vm4, %v496_v53, %v481_v54 }
0x11e8   :  { %v500_v58 = vsel %vm499_vm5, %v498_v55, %v484_v56 }
0x11ee   :  { %v529_v63 = vpop.permute.xlu1 %528 }
0x123a   :  { %v488_v57 = vpop.permute.xlu2 %487 }
0x123b   :  { %v502_v59 = vsel %vm501_vm6, %v500_v58, %v488_v57 }
0x123c   :  { %520 = vmatmul.f32.vlgmr.msra.gmra.mxu0 %v502_v59 }
0x1252   :  { %v525_v62 = vpop.permute.xlu0 %524 }
0x12b9   :  { %v521_v60 = vpop.f32.mrf.mxu0 }
0x12ba   :  { %v522_v19 = vadd.f32 %v579_v26, %v521_v60 }
0x12bc   :  { %v532_v0 = vsel %vm531_vm7, %v522_v19, %v525_v62 }
0x12bd   :  { %v534_v1 = vsel %vm533_vm8, %v532_v0, %v529_v63 }
0x12be   :  { %536 = vst.msk [vmem:[#allocation2] sm:$0xff] %vm535_vm9, %v534_v1 }
0x12bf   :  { %547 = dma.vmem_to_hbm [thread:$0]  %s543_s23, 128, %s545_s26, [#allocation3]  }
0x12c0   :  { %636 = dma.done.wait [#allocation3], 128  }
0x12c1   :  { %637 = vsyncadd [#allocation3], 4294967168 }
0x12c2   :  { %552 = vsyncpa [#allocation3], 1 }

</bundles_post_ra>
